<compile_context>
chip_gen: v7x
topology: tpu7x:2x2x1
jax: 0.10.0
libtpu: 0.0.40
codegen_flags: <defaults>
</compile_context>

<pallas_src>
import functools

import jax
import jax.numpy as jnp
from jax.experimental import pallas as pl
from jax.experimental.pallas import tpu as pltpu

H = 128                        # hidden width of layer1 / layer2 (from the module)
_HEAD_ORDER = (0, 4, 1, 2, 3)  # sigmoid heads (deploy=0, move_mech=4) packed first
_SIGMOID_HEADS = (0, 4)
_PAD_TO = 32                   # fused head width padding (20 real cols -> 32)


def _round_up(x, m):
    return ((x + m - 1) // m) * m


def _cdiv(a, b):
    return (a + b - 1) // b


def _choose_tm(B, tm_max):
    """Adaptive row tile.
    - small / latency batches: one just-fits tile (multiple of 8 sublanes)
    - throughput batches: cap at tm_max, round the grid-step count up to an
      even number so v7x's two TensorCores split the parallel axis evenly.
    """
    B8 = _round_up(B, 8)
    if B8 <= 256:
        return B8
    steps = _cdiv(B8, tm_max)
    steps += steps & 1                      # force an even step count
    return _round_up(_cdiv(B8, steps), 8)


def _dqn_kernel(x_ref, w1_ref, b1_ref, w2_ref, b2_ref, wh_ref, bh_ref, out_ref,
                *, n_sig):
    # layer1 + ReLU  (bf16 x bf16 -> f32 accumulate, f32 epilogue)
    h1 = jnp.dot(x_ref[...].astype(jnp.bfloat16), w1_ref[...],
                 preferred_element_type=jnp.float32)
    h1 = jnp.maximum(h1 + b1_ref[...], 0.0)
    # layer2 + ReLU
    h2 = jnp.dot(h1.astype(jnp.bfloat16), w2_ref[...],
                 preferred_element_type=jnp.float32)
    h2 = jnp.maximum(h2 + b2_ref[...], 0.0)
    # fused heads: z = h2 @ W_heads + b_heads   (lane width P = 32)
    z = jnp.dot(h2.astype(jnp.bfloat16), wh_ref[...],
                preferred_element_type=jnp.float32) + bh_ref[...]
    # sigmoid: exp on the EUP + approx reciprocal on the EUP (not a VALU divide)
    s = pl.reciprocal(1.0 + jnp.exp(-z), approx=True)
    # selective sigmoid on the first n_sig (static) columns only
    col = jax.lax.broadcasted_iota(jnp.int32, z.shape, 1)
    out_ref[...] = jnp.where(col < n_sig, s, z)


@functools.partial(jax.jit, static_argnames=("n_actions", "tm_max"))
def dqn_forward(x, params, n_actions, tm_max=512):
    """x: (B, n_obs) float32. Returns list of 5 head outputs in original order."""
    w1, b1, w2, b2, wh, bh = params
    B, n_obs = x.shape
    P = wh.shape[1]                                     # fused head width (32)
    n_sig = sum(n_actions[i] for i in _SIGMOID_HEADS)   # static python int

    tm = _choose_tm(B, tm_max)
    B_pad = _round_up(B, tm)
    if B_pad != B:
        x = jnp.pad(x, ((0, B_pad - B), (0, 0)))

    pinned = lambda shape: pl.BlockSpec(shape, lambda i: (0, 0))  # VMEM-resident

    flops = 2 * B_pad * (n_obs * H + H * H + H * P)
    bytes_accessed = (B_pad * n_obs * 4 + B_pad * P * 4           # x in / out
                      + (n_obs * H + H * H + H * P) * 2           # bf16 weights
                      + (H + H + P) * 4)                          # f32 biases

    out = pl.pallas_call(
        functools.partial(_dqn_kernel, n_sig=n_sig),
        out_shape=jax.ShapeDtypeStruct((B_pad, P), jnp.float32),
        grid=(B_pad // tm,),
        in_specs=[
            pl.BlockSpec((tm, n_obs), lambda i: (i, 0)),   # x streams
            pinned((n_obs, H)), pinned((1, H)),            # w1, b1
            pinned((H, H)), pinned((1, H)),                # w2, b2
            pinned((H, P)), pinned((1, P)),                # wh, bh
        ],
        out_specs=pl.BlockSpec((tm, P), lambda i: (i, 0)),
        compiler_params=pltpu.CompilerParams(
            dimension_semantics=("parallel",)),
        cost_estimate=pl.CostEstimate(flops=flops,
                                      transcendentals=B_pad * P,
                                      bytes_accessed=bytes_accessed),
    )(x, w1, b1, w2, b2, wh, bh)

    out = out[:B]

    # split the fused (reordered) output back into the 5 original heads
    offsets = {}
    off = 0
    for idx in _HEAD_ORDER:
        offsets[idx] = off
        off += n_actions[idx]
    return [out[:, offsets[i]:offsets[i] + n_actions[i]] for i in range(len(n_actions))]


def make_params(key, n_obs, n_actions, pad_to=_PAD_TO):
    """Init mimicking nn.Linear (uniform(-1/sqrt(fan_in), +1/sqrt(fan_in))).
    Weights stored (in, out) in bf16; biases in f32.
    Returns (kernel_params, per_head_params) — the latter for the reference."""
    keys = jax.random.split(key, 4 + 2 * len(n_actions))
    ki = iter(keys)

    def linear(in_f, out_f):
        bound = 1.0 / jnp.sqrt(jnp.float32(in_f))
        w = jax.random.uniform(next(ki), (in_f, out_f), jnp.float32, -bound, bound)
        b = jax.random.uniform(next(ki), (1, out_f), jnp.float32, -bound, bound)
        return w.astype(jnp.bfloat16), b

    w1, b1 = linear(n_obs, H)
    w2, b2 = linear(H, H)
    heads = [linear(H, n) for n in n_actions]          # original head order

    # pack heads with sigmoid heads first, then zero-pad width to a multiple of pad_to
    wh = jnp.concatenate([heads[i][0] for i in _HEAD_ORDER], axis=1)
    bh = jnp.concatenate([heads[i][1] for i in _HEAD_ORDER], axis=1)
    total = wh.shape[1]
    P = _round_up(total, pad_to)
    wh = jnp.pad(wh, ((0, 0), (0, P - total)))         # (H, 32) bf16
    bh = jnp.pad(bh, ((0, 0), (0, P - total)))         # (1, 32) f32

    return (w1, b1, w2, b2, wh, bh), heads


def reference_forward(x, kernel_params, heads, n_actions):
    """Pure-JAX reference with the same bf16-matmul / f32-accumulate semantics
    as the kernel, built from the UNPACKED per-head weights (independently
    checks the pack / reorder / pad / split plumbing)."""
    w1, b1, w2, b2, _, _ = kernel_params
    bf16, f32 = jnp.bfloat16, jnp.float32
    h = jax.nn.relu(jnp.dot(x.astype(bf16), w1, preferred_element_type=f32) + b1)
    h = jax.nn.relu(jnp.dot(h.astype(bf16), w2, preferred_element_type=f32) + b2)
    hb = h.astype(bf16)
    decs = []
    for i, (w, b) in enumerate(heads):
        z = jnp.dot(hb, w, preferred_element_type=f32) + b
        decs.append(1.0 / (1.0 + jnp.exp(-z)) if i in _SIGMOID_HEADS else z)
    return decs


if __name__ == "__main__":
    n_obs = 32
    n_actions = (4, 6, 3, 5, 2)   # (deploy, mission, heal_mech, attack, move_mech)

    key = jax.random.PRNGKey(0)
    k_param, k_x1, k_x2, k_x3 = jax.random.split(key, 4)
    params, heads = make_params(k_param, n_obs, n_actions)

    # three batch sizes: tiny latency tile (B=8), one full tile (B=200),
    # and a multi-step grid (B=300 -> tm=152, 2 parallel grid steps)
    for k_x, B in ((k_x1, 8), (k_x2, 200), (k_x3, 300)):
        x = jax.random.normal(k_x, (B, n_obs), jnp.float32)

        decs = dqn_forward(x, params, n_actions)
        decs = [jax.block_until_ready(d) for d in decs]

        refs = reference_forward(x, params, heads, n_actions)
        for i, (d, r, n) in enumerate(zip(decs, refs, n_actions)):
            assert d.shape == (B, n), (i, d.shape)
            assert jnp.allclose(d, r, atol=2e-3, rtol=2e-3), f"head {i} mismatch (B={B})"

    print("KERNEL_OK")
</pallas_src>

<mosaic_0001>
module attributes {stable_mosaic.version = 11 : i64} {
  func.func @_dqn_kernel(%arg0: i32, %arg1: memref<8x32xf32, #tpu.memory_space<vmem>>, %arg2: memref<32x128xbf16, #tpu.memory_space<vmem>>, %arg3: memref<1x128xf32, #tpu.memory_space<vmem>>, %arg4: memref<128x128xbf16, #tpu.memory_space<vmem>>, %arg5: memref<1x128xf32, #tpu.memory_space<vmem>>, %arg6: memref<128x32xbf16, #tpu.memory_space<vmem>>, %arg7: memref<1x32xf32, #tpu.memory_space<vmem>>, %arg8: memref<8x32xf32, #tpu.memory_space<vmem>>) attributes {dimension_semantics = [#tpu.dimension_semantics<parallel>], iteration_bounds = array<i64: 1>, scalar_prefetch = 0 : i64, scratch_operands = 0 : i64, tpu.core_type = #tpu.core_type<tc>, window_params = [{transform_indices = @transform_0, window_bounds = array<i64: 8, 32>}, {pipeline_mode = #tpu.pipeline_mode<synchronous>, transform_indices = @transform_1, window_bounds = array<i64: 32, 128>}, {pipeline_mode = #tpu.pipeline_mode<synchronous>, transform_indices = @transform_2, window_bounds = array<i64: 1, 128>}, {pipeline_mode = #tpu.pipeline_mode<synchronous>, transform_indices = @transform_3, window_bounds = array<i64: 128, 128>}, {pipeline_mode = #tpu.pipeline_mode<synchronous>, transform_indices = @transform_4, window_bounds = array<i64: 1, 128>}, {pipeline_mode = #tpu.pipeline_mode<synchronous>, transform_indices = @transform_5, window_bounds = array<i64: 128, 32>}, {pipeline_mode = #tpu.pipeline_mode<synchronous>, transform_indices = @transform_6, window_bounds = array<i64: 1, 32>}, {transform_indices = @transform_7, window_bounds = array<i64: 8, 32>}]} {
    %c0 = arith.constant 0 : index
    %c0_0 = arith.constant 0 : index
    %0 = vector.load %arg1[%c0, %c0_0] : memref<8x32xf32, #tpu.memory_space<vmem>>, vector<8x32xf32>
    %1 = arith.truncf %0 : vector<8x32xf32> to vector<8x32xbf16>
    %c0_1 = arith.constant 0 : index
    %c0_2 = arith.constant 0 : index
    %2 = vector.load %arg2[%c0_1, %c0_2] : memref<32x128xbf16, #tpu.memory_space<vmem>>, vector<32x128xbf16>
    %cst = arith.constant dense<0.000000e+00> : vector<8x128xf32>
    %3 = tpu.matmul %1, %2, %cst {dimension_numbers = #tpu.dot_dimension_numbers<[1], [0], [0], [1], [0, 0, 1, 1], [], []>} : vector<8x32xbf16>, vector<32x128xbf16>, vector<8x128xf32> -> vector<8x128xf32>
    %c0_3 = arith.constant 0 : index
    %c0_4 = arith.constant 0 : index
    %4 = vector.load %arg3[%c0_3, %c0_4] : memref<1x128xf32, #tpu.memory_space<vmem>>, vector<1x128xf32>
    %5 = vector.broadcast %4 : vector<1x128xf32> to vector<8x128xf32>
    %6 = arith.addf %3, %5 : vector<8x128xf32>
    %cst_5 = arith.constant 0.000000e+00 : f32
    %7 = vector.broadcast %cst_5 : f32 to vector<8x128xf32>
    %8 = arith.maximumf %6, %7 : vector<8x128xf32>
    %9 = arith.truncf %8 : vector<8x128xf32> to vector<8x128xbf16>
    %c0_6 = arith.constant 0 : index
    %c0_7 = arith.constant 0 : index
    %10 = vector.load %arg4[%c0_6, %c0_7] : memref<128x128xbf16, #tpu.memory_space<vmem>>, vector<128x128xbf16>
    %cst_8 = arith.constant dense<0.000000e+00> : vector<8x128xf32>
    %11 = tpu.matmul %9, %10, %cst_8 {dimension_numbers = #tpu.dot_dimension_numbers<[1], [0], [0], [1], [0, 0, 1, 1], [], []>} : vector<8x128xbf16>, vector<128x128xbf16>, vector<8x128xf32> -> vector<8x128xf32>
    %c0_9 = arith.constant 0 : index
    %c0_10 = arith.constant 0 : index
    %12 = vector.load %arg5[%c0_9, %c0_10] : memref<1x128xf32, #tpu.memory_space<vmem>>, vector<1x128xf32>
    %13 = vector.broadcast %12 : vector<1x128xf32> to vector<8x128xf32>
    %14 = arith.addf %11, %13 : vector<8x128xf32>
    %cst_11 = arith.constant 0.000000e+00 : f32
    %15 = vector.broadcast %cst_11 : f32 to vector<8x128xf32>
    %16 = arith.maximumf %14, %15 : vector<8x128xf32>
    %17 = arith.truncf %16 : vector<8x128xf32> to vector<8x128xbf16>
    %c0_12 = arith.constant 0 : index
    %c0_13 = arith.constant 0 : index
    %18 = vector.load %arg6[%c0_12, %c0_13] : memref<128x32xbf16, #tpu.memory_space<vmem>>, vector<128x32xbf16>
    %cst_14 = arith.constant dense<0.000000e+00> : vector<8x32xf32>
    %19 = tpu.matmul %17, %18, %cst_14 {dimension_numbers = #tpu.dot_dimension_numbers<[1], [0], [0], [1], [0, 0, 1, 1], [], []>} : vector<8x128xbf16>, vector<128x32xbf16>, vector<8x32xf32> -> vector<8x32xf32>
    %c0_15 = arith.constant 0 : index
    %c0_16 = arith.constant 0 : index
    %20 = vector.load %arg7[%c0_15, %c0_16] : memref<1x32xf32, #tpu.memory_space<vmem>>, vector<1x32xf32>
    %21 = vector.broadcast %20 : vector<1x32xf32> to vector<8x32xf32>
    %22 = arith.addf %19, %21 : vector<8x32xf32>
    %cst_17 = arith.constant 0.000000e+00 : f32
    %23 = vector.broadcast %cst_17 : f32 to vector<8x32xf32>
    %24 = arith.subf %23, %22 : vector<8x32xf32>
    %25 = math.exp %24 : vector<8x32xf32>
    %cst_18 = arith.constant 1.000000e+00 : f32
    %26 = vector.broadcast %cst_18 : f32 to vector<8x32xf32>
    %27 = arith.addf %26, %25 : vector<8x32xf32>
    %28 = tpu.reciprocal %27 {approx = true} : vector<8x32xf32> -> vector<8x32xf32>
    %29 = tpu.iota {dimensions = array<i32: 1>} : vector<8x32xi32>
    %c6_i32 = arith.constant 6 : i32
    %30 = vector.broadcast %c6_i32 : i32 to vector<8x32xi32>
    %31 = arith.cmpi slt, %29, %30 : vector<8x32xi32>
    %32 = arith.select %31, %28, %22 : vector<8x32xi1>, vector<8x32xf32>
    %c0_19 = arith.constant 0 : index
    %c0_20 = arith.constant 0 : index
    %33 = vector.load %arg8[%c0_19, %c0_20] : memref<8x32xf32, #tpu.memory_space<vmem>>, vector<8x32xf32>
    tpu.vector_store %arg8[%c0_19, %c0_20], %32 {strides = array<i32>} : memref<8x32xf32, #tpu.memory_space<vmem>>, vector<8x32xf32>,
    return
  }
  func.func @transform_0(%arg0: i32) -> (i32, i32) {
    %c0_i32 = arith.constant 0 : i32
    %c0_i32_0 = arith.constant 0 : i32
    return %arg0, %c0_i32 : i32, i32
  }
  func.func @transform_1(%arg0: i32) -> (i32, i32) {
    %c0_i32 = arith.constant 0 : i32
    %c0_i32_0 = arith.constant 0 : i32
    %c0_i32_1 = arith.constant 0 : i32
    return %c0_i32, %c0_i32_0 : i32, i32
  }
  func.func @transform_2(%arg0: i32) -> (i32, i32) {
    %c0_i32 = arith.constant 0 : i32
    %c0_i32_0 = arith.constant 0 : i32
    %c0_i32_1 = arith.constant 0 : i32
    return %c0_i32, %c0_i32_0 : i32, i32
  }
  func.func @transform_3(%arg0: i32) -> (i32, i32) {
    %c0_i32 = arith.constant 0 : i32
    %c0_i32_0 = arith.constant 0 : i32
    %c0_i32_1 = arith.constant 0 : i32
    return %c0_i32, %c0_i32_0 : i32, i32
  }
  func.func @transform_4(%arg0: i32) -> (i32, i32) {
    %c0_i32 = arith.constant 0 : i32
    %c0_i32_0 = arith.constant 0 : i32
    %c0_i32_1 = arith.constant 0 : i32
    return %c0_i32, %c0_i32_0 : i32, i32
  }
  func.func @transform_5(%arg0: i32) -> (i32, i32) {
    %c0_i32 = arith.constant 0 : i32
    %c0_i32_0 = arith.constant 0 : i32
    %c0_i32_1 = arith.constant 0 : i32
    return %c0_i32, %c0_i32_0 : i32, i32
  }
  func.func @transform_6(%arg0: i32) -> (i32, i32) {
    %c0_i32 = arith.constant 0 : i32
    %c0_i32_0 = arith.constant 0 : i32
    %c0_i32_1 = arith.constant 0 : i32
    return %c0_i32, %c0_i32_0 : i32, i32
  }
  func.func @transform_7(%arg0: i32) -> (i32, i32) {
    %c0_i32 = arith.constant 0 : i32
    %c0_i32_0 = arith.constant 0 : i32
    return %arg0, %c0_i32 : i32, i32
  }
}

</mosaic_0001>

<bundles_post_ra>
// kernel: dqn_forward.1
= control target key start
LH: loop header
LB: loop body
LE: loop exit
PB: predicated region body
PF: predicated region fallthrough
CT: control target
= control target key end

     0   :  { %12 = vsyncpa [#allocation3], 0  ;;  %s489_s24 = smov [#allocation2]   ;;  %s636_s0 = inlined_call_operand.hbm [shape: f32[8,32], index: 0, kind: input, shape index: {}]   ;;  %s637_s1 = inlined_call_operand.vmem [shape: bf16[32,128], index: 1, kind: input, shape index: {}]   ;;  %s638_s2 = inlined_call_operand.vmem [shape: f32[1,128], index: 2, kind: input, shape index: {}]   ;;  %s639_s3 = inlined_call_operand.vmem [shape: bf16[128,128], index: 3, kind: input, shape index: {}]   ;;  %s640_s4 = inlined_call_operand.vmem [shape: f32[1,128], index: 4, kind: input, shape index: {}]   ;;  %s641_s5 = inlined_call_operand.vmem [shape: bf16[128,32], index: 5, kind: input, shape index: {}]   ;;  %s642_s6 = inlined_call_operand.vmem [shape: f32[1,32], index: 6, kind: input, shape index: {}]   ;;  %s643_s7 = inlined_call_operand.vmem [shape: f32[8,32], index: 7, kind: output, shape index: {}]  }
   0x1   :  { %s19_s25 = sshll.u32 %s489_s24, 4  ;;  %s465_s28 = scalar_lea.hbm %s636_s0, 128  ;;  %s20_s25 = int_to_ptr.vmem [resolvable:$true] %s19_s25 }
   0x2   :  { %p466_p0 = scmp.ne.s32.totalorder %s636_s0, %s465_s28  ;;  %p469_p1 = scmp.lt.u32.totalorder %s465_s28, %s636_s0 }
   0x4   :  { %p471_p2 = pnand %p469_p1, %p466_p0 }
   0x6   :  { %474 = shalt.err (!%p471_p2)
}
   0x7   :  { %s475_s10 = scalar_lea.vmem %s20_s25, 128  ;;  %p480_p4 = scmp.lt.s32.totalorder %s20_s25, %s20_s25 }
   0x8   :  { %p476_p3 = scmp.ne.s32.totalorder %s20_s25, %s475_s10  ;;  %p481_p5 = scmp.lt.s32.totalorder %s475_s10, %s475_s10 }
   0xa   :  { %p482_p6 = por %p481_p5, %p480_p4 }
   0xc   :  { %p483_p7 = pnand %p482_p6, %p476_p3 }
   0xe   :  { %486 = shalt.err (!%p483_p7)
}
   0xf   :  { %22 = dma.hbm_to_vmem [thread:$0]  %s636_s0, 128, %s20_s25, [#allocation3]  }
  0x10   :  { %487 = dma.done.wait [#allocation3], 128  }
  0x11   :  { %488 = vsyncadd [#allocation3], 4294967168  ;;  %v490_v0 = vmov 0.0   ;;  %vm491_vm0 = vmmov 0   ;;  %v443_v1 = vld [vmem:[%s637_s1] sm:$0xff]   ;;  %v444_v2 = vld [vmem:[%s637_s1 + $0x8] sm:$0xff]   ;;  %v339_v47 = vlaneseq }
  0x12   :  { %392 = vmatprep.subr.bf16.mxu0 %v490_v0  ;;  %396 = vmatprep.mubr.msk.bf16.mxu0 %vm491_vm0, %v490_v0  ;;  %v39_v3 = vld [vmem:[#allocation2] sm:$0xff]  ;;  %v446_v6 = vld [vmem:[%s639_s3 + $0x8] sm:$0xff]   ;;  %vm64_vm1 = vcmask 261120   ;;  %v447_v7 = vld [vmem:[%s639_s3 + $0x10] sm:$0xff]  }
  0x13   :  { %400 = vmatprep.subr.bf16.mxu1 %v490_v0  ;;  %416 = vmatprep.mubr.msk.bf16.mxu1 %vm491_vm0, %v490_v0  ;;  %v445_v4 = vld [vmem:[%s639_s3] sm:$0xff]   ;;  %v40_v5 = vpack.c.bf16 %v39_v3, %v39_v3  ;;  %v448_v8 = vld [vmem:[%s639_s3 + $0x18] sm:$0xff]   ;;  %v450_v10 = vld [vmem:[%s639_s3 + $0x28] sm:$0xff]   ;;  %v340_v48 = vand.u32 127, %v339_v47 }
  0x14   :  { %393 = vmatpush3.bf16.msra.mxu0 %v443_v1  ;;  %401 = vmatpush3.bf16.msra.mxu1 %v445_v4  ;;  %v449_v9 = vld [vmem:[%s639_s3 + $0x20] sm:$0xff]   ;;  %v451_v11 = vld [vmem:[%s639_s3 + $0x30] sm:$0xff]   ;;  %v452_v12 = vld [vmem:[%s639_s3 + $0x38] sm:$0xff]  }
  0x15   :  { %394 = vmatprep.subr.bf16.mxu0 %v490_v0  ;;  %402 = vmatprep.subr.bf16.mxu1 %v490_v0  ;;  %v453_v13 = vld [vmem:[%s641_s5] sm:$0xff]   ;;  %v454_v14 = vld [vmem:[%s641_s5 + $0x8] sm:$0xff]   ;;  %v455_v15 = vld [vmem:[%s641_s5 + $0x10] sm:$0xff]   ;;  %vm341_vm2 = vcmp.lt.s32.totalorder %v340_v48, 6 }
  0x16   :  { %v456_v16 = vld [vmem:[%s641_s5 + $0x18] sm:$0xff]   ;;  %v457_v17 = vld [vmem:[%s641_s5 + $0x20] sm:$0xff]   ;;  %v458_v18 = vld [vmem:[%s641_s5 + $0x28] sm:$0xff]  }
  0x17   :  { %v349_v19 = vld [vmem:[%s638_s2] ss:$0 sm:$0xff]  ;;  %v459_v27 = vld [vmem:[%s641_s5 + $0x30] sm:$0xff]   ;;  %v460_v28 = vld [vmem:[%s641_s5 + $0x38] sm:$0xff]  }
  0x18   :  { %395 = vmatpush3.bf16.msra.mxu0 %v444_v2  ;;  %403 = vmatpush3.bf16.msra.mxu1 %v446_v6  ;;  %v353_v29 = vld [vmem:[%s640_s4] ss:$0 sm:$0xff] }
  0x19   :  { %420 = vmatprep.subr.bf16.mxu0 %v490_v0  ;;  %404 = vmatprep.subr.bf16.mxu1 %v490_v0  ;;  %v362_v37 = vld [vmem:[%s642_s6] ss:$0 sm:$0xff] }
  0x1b   :  { %397 = vmatmul.mubr.msk.bf16.vlgmr.msra.gmra.mrb[0].mxu0 %vm64_vm1, %v40_v5 }
  0x1c   :  { %436 = vmatprep.mubr.msk.bf16.mxu0 %vm491_vm0, %v490_v0  ;;  %405 = vmatpush3.bf16.msra.mxu1 %v447_v7 }
  0x1d   :  { %406 = vmatprep.subr.bf16.mxu1 %v490_v0  ;;  %421 = vmatpush3.bf16.msra.mxu0 %v453_v13 }
  0x1e   :  { %422 = vmatprep.subr.bf16.mxu0 %v490_v0 }
  0x20   :  { %407 = vmatpush3.bf16.msra.mxu1 %v448_v8 }
  0x21   :  { %408 = vmatprep.subr.bf16.mxu1 %v490_v0  ;;  %423 = vmatpush3.bf16.msra.mxu0 %v454_v14 }
  0x22   :  { %424 = vmatprep.subr.bf16.mxu0 %v490_v0 }
  0x24   :  { %409 = vmatpush3.bf16.msra.mxu1 %v449_v9 }
  0x25   :  { %410 = vmatprep.subr.bf16.mxu1 %v490_v0  ;;  %425 = vmatpush3.bf16.msra.mxu0 %v455_v15 }
  0x26   :  { %426 = vmatprep.subr.bf16.mxu0 %v490_v0 }
  0x28   :  { %411 = vmatpush3.bf16.msra.mxu1 %v450_v10 }
  0x29   :  { %412 = vmatprep.subr.bf16.mxu1 %v490_v0  ;;  %427 = vmatpush3.bf16.msra.mxu0 %v456_v16 }
  0x2a   :  { %428 = vmatprep.subr.bf16.mxu0 %v490_v0 }
  0x2c   :  { %413 = vmatpush3.bf16.msra.mxu1 %v451_v11 }
  0x2d   :  { %414 = vmatprep.subr.bf16.mxu1 %v490_v0  ;;  %429 = vmatpush3.bf16.msra.mxu0 %v457_v17 }
  0x2e   :  { %430 = vmatprep.subr.bf16.mxu0 %v490_v0 }
  0x30   :  { %415 = vmatpush3.bf16.msra.mxu1 %v452_v12 }
  0x31   :  { %431 = vmatpush3.bf16.msra.mxu0 %v458_v18 }
  0x32   :  { %432 = vmatprep.subr.bf16.mxu0 %v490_v0 }
  0x35   :  { %433 = vmatpush3.bf16.msra.mxu0 %v459_v27 }
  0x36   :  { %434 = vmatprep.subr.bf16.mxu0 %v490_v0 }
  0x39   :  { %435 = vmatpush3.bf16.msra.mxu0 %v460_v28 }
  0xee   :  { %v102_v20 = vpop.f32.mrb[0].mxu0 }
  0xef   :  { %v103_v21 = vadd.f32 %v349_v19, %v102_v20  ;;  %v398_v22 = vpop.f32.mrb[1].mxu0 }
  0xf0   :  { %v105_v23 = vpop.f32.mrb[2].mxu0 }
  0xf1   :  { %v108_v24 = vmax.f32 %v103_v21, 0.0  ;;  %v399_v25 = vpop.f32.mrb[3].mxu0 }
  0xf3   :  { %v109_v26 = vpack.c.bf16 %v108_v24, %v108_v24 }
  0xf5   :  { %417 = vmatmul.mubr.bf16.vlgmr.msra.gmra.mrb[0].mxu1 %v109_v26 }
 0x1c8   :  { %v215_v30 = vpop.f32.mrb[0].mxu1 }
 0x1c9   :  { %v216_v31 = vadd.f32 %v353_v29, %v215_v30  ;;  %v418_v32 = vpop.f32.mrb[1].mxu1 }
 0x1ca   :  { %v218_v33 = vpop.f32.mrb[2].mxu1 }
 0x1cb   :  { %v221_v34 = vmax.f32 %v216_v31, 0.0  ;;  %v419_v35 = vpop.f32.mrb[3].mxu1 }
 0x1cd   :  { %v222_v36 = vpack.c.bf16 %v221_v34, %v221_v34 }
 0x1cf   :  { %437 = vmatmul.mubr.bf16.vlgmr.msra.gmra.mrb[4].mxu0 %v222_v36 }
 0x2a2   :  { %v328_v38 = vpop.f32.mrb[4].mxu0 }
 0x2a3   :  { %v329_v39 = vadd.f32 %v362_v37, %v328_v38  ;;  %v438_v40 = vpop.f32.mrb[5].mxu0 }
 0x2a4   :  { %v331_v41 = vpop.f32.mrb[6].mxu0 }
 0x2a5   :  { %v334_v42 = vsub.f32 0.0, %v329_v39  ;;  %v439_v43 = vpop.f32.mrb[7].mxu0 }
 0x2a7   :  { %v335_v44 = vmul.f32 1.442695, %v334_v42 }
 0x2a9   :  { %461 = vpow2.f32 %v335_v44 }
 0x2b3   :  { %v462_v45 = vpop.eup %461 }
 0x2b4   :  { %v337_v46 = vadd.f32 1.0, %v462_v45 }
 0x2b6   :  { %463 = vrcp.f32 %v337_v46 }
 0x2c0   :  { %v464_v49 = vpop.eup %463 }
 0x2c1   :  { %v342_v50 = vsel %vm341_vm2, %v464_v49, %v329_v39 }
 0x2c2   :  { %343 = vst.msk [vmem:[%s643_s7] sm:$0xff] %vm64_vm1, %v342_v50 }
 0x2c3   :  { %348 = vsyncpa [#allocation3], 1 }

</bundles_post_ra>
